<compile_context>
chip_gen: v6e
topology: v6e:2x2x1
jax: 0.10.0
libtpu: 0.0.40
codegen_flags: <defaults>
</compile_context>

<pallas_src>
import math

import jax
import jax.numpy as jnp
from jax.experimental import pallas as pl
from jax.experimental.pallas import tpu as pltpu

_FALLBACK_COLS = 1024                   # used only on the (rare) pad path
_TARGET_BLOCK_BYTES = 4 * 1024 * 1024   # ~4 MiB per operand per grid step


def _add_kernel(a_ref, b_ref, o_ref):
    # Pure elementwise add on the current VMEM tile (VPU path; HBM-bound).
    o_ref[...] = a_ref[...] + b_ref[...]


def _tpu_generation_info():
    """Return (tensorcores_per_chip, vmem_limit_bytes, hbm_GBps_per_chip)."""
    kind = ""
    try:
        kind = jax.devices()[0].device_kind.lower()
    except Exception:
        pass
    if "v7" in kind or "tpu7" in kind or "tpu 7" in kind:
        # v7x: 2 TCs/chip, 64 MiB physical VMEM per TC -> keep headroom.
        return 2, 40 << 20, 3200
    if "v6" in kind or "trillium" in kind:
        return 1, 64 << 20, 1400
    if "v5" in kind:
        return 1, 64 << 20, 820
    # Unknown / CPU interpret: conservative single-core defaults.
    return 1, 64 << 20, 820


def _choose_rows_tile(rows, cols, itemsize, num_tc, vmem_limit_bytes, hbm_gbps):
    """Pick the row-tile for a (rows, cols) slab (cols a multiple of 128)."""
    sublane = max(8, 32 // itemsize)          # f32: 8, bf16: 16, int8/fp8: 32

    # Per-operand block-byte cap: ~4 MiB, bounded by scoped VMEM budget
    # (2 inputs + 1 output, double-buffered => 6 live blocks) with headroom.
    cap_bytes = min(_TARGET_BLOCK_BYTES, (vmem_limit_bytes - (2 << 20)) // 6)
    cap_rows = max(sublane, (cap_bytes // (cols * itemsize)) // sublane * sublane)

    # Single-TC generations: take the whole slab in one block when it fits
    # (no forced split; a full-extent block dim is always layout-legal).
    if num_tc == 1 and rows * cols * itemsize <= cap_bytes:
        return rows

    # Per-step overhead (~0.35 us) expressed in row-equivalents of HBM traffic.
    bytes_per_row = 3 * cols * itemsize       # 2 reads + 1 write per row
    hbm_bps_per_tc = hbm_gbps * 1e9 / num_tc
    overhead_rows = max(8, int(0.35e-6 * hbm_bps_per_tc / bytes_per_row))

    rt_max = min(cap_rows, pl.cdiv(rows, sublane) * sublane)
    best_rt, best_cost = sublane, None
    rt = sublane
    while rt <= rt_max:
        steps = pl.cdiv(rows, rt)
        per_tc_blocks = pl.cdiv(steps, num_tc)        # worst-case blocks per TC
        rows_per_tc = min(rows, per_tc_blocks * rt)   # worst-case rows per TC
        cost = rows_per_tc + per_tc_blocks * overhead_rows
        if best_cost is None or cost <= best_cost:    # ties favor larger tiles
            best_cost, best_rt = cost, rt
        rt += sublane
    return best_rt


def pallas_add(x270, x262):
    assert x270.shape == x262.shape and x270.dtype == x262.dtype
    orig_shape = x270.shape
    dtype = x270.dtype
    itemsize = jnp.dtype(dtype).itemsize
    total = int(math.prod(orig_shape)) if orig_shape else 1

    num_tc, vmem_limit, hbm_gbps = _tpu_generation_info()

    # Pick a lane-dense column width that divides the flat size exactly (no
    # padding); fall back to zero-padding only if no multiple of 128 divides it.
    cols = None
    for c in (1024, 512, 256, 128):
        if total % c == 0 and total >= c:
            cols = c
            break
    pad = 0
    if cols is None:
        cols = _FALLBACK_COLS
        pad = pl.cdiv(total, cols) * cols - total

    a = x270.reshape(-1)
    b = x262.reshape(-1)
    if pad:
        a = jnp.pad(a, (0, pad))
        b = jnp.pad(b, (0, pad))
    rows = (total + pad) // cols
    a2 = a.reshape(rows, cols)
    b2 = b.reshape(rows, cols)

    rows_tile = _choose_rows_tile(rows, cols, itemsize, num_tc, vmem_limit,
                                  hbm_gbps)
    grid = (pl.cdiv(rows, rows_tile),)
    spec = pl.BlockSpec((rows_tile, cols), lambda i: (i, 0))

    out2 = pl.pallas_call(
        _add_kernel,
        out_shape=jax.ShapeDtypeStruct((rows, cols), dtype),
        grid_spec=pltpu.PrefetchScalarGridSpec(
            num_scalar_prefetch=0,
            grid=grid,
            in_specs=[spec, spec],
            out_specs=spec,
        ),
        compiler_params=pltpu.CompilerParams(
            dimension_semantics=("parallel",),
            vmem_limit_bytes=vmem_limit,
        ),
    )(a2, b2)

    out = out2.reshape(-1)
    if pad:
        out = out[:total]
    return out.reshape(orig_shape)


if __name__ == "__main__":
    # Small shape consistent with the module's (N, C, H, W) = (1, 1024, 28, 28):
    # keep the 28x28 spatial extent, shrink channels to 64.
    key = jax.random.PRNGKey(0)
    k1, k2 = jax.random.split(key)
    shape = (1, 64, 28, 28)
    x270 = jax.random.normal(k1, shape, dtype=jnp.float32)
    x262 = jax.random.normal(k2, shape, dtype=jnp.float32)

    out = pallas_add(x270, x262)
    out = jax.block_until_ready(out)

    # Correctness check against plain JAX reference.
    ref = x270 + x262
    assert out.shape == ref.shape and out.dtype == ref.dtype
    assert jnp.allclose(out, ref, atol=1e-6, rtol=1e-6)

    print("KERNEL_OK")
</pallas_src>

<mosaic_0001>
module attributes {stable_mosaic.version = 11 : i64} {
  func.func @_add_kernel(%arg0: i32, %arg1: memref<49x1024xf32, #tpu.memory_space<vmem>>, %arg2: memref<49x1024xf32, #tpu.memory_space<vmem>>, %arg3: memref<49x1024xf32, #tpu.memory_space<vmem>>) attributes {dimension_semantics = [#tpu.dimension_semantics<parallel>], iteration_bounds = array<i64: 1>, scalar_prefetch = 0 : i64, scratch_operands = 0 : i64, tpu.core_type = #tpu.core_type<tc>, window_params = [{transform_indices = @transform_0, window_bounds = array<i64: 49, 1024>}, {transform_indices = @transform_1, window_bounds = array<i64: 49, 1024>}, {transform_indices = @transform_2, window_bounds = array<i64: 49, 1024>}]} {
    %c0 = arith.constant 0 : index
    %c0_0 = arith.constant 0 : index
    %0 = vector.load %arg1[%c0, %c0_0] : memref<49x1024xf32, #tpu.memory_space<vmem>>, vector<49x1024xf32>
    %c0_1 = arith.constant 0 : index
    %c0_2 = arith.constant 0 : index
    %1 = vector.load %arg2[%c0_1, %c0_2] : memref<49x1024xf32, #tpu.memory_space<vmem>>, vector<49x1024xf32>
    %2 = arith.addf %0, %1 : vector<49x1024xf32>
    %c0_3 = arith.constant 0 : index
    %c0_4 = arith.constant 0 : index
    %3 = vector.load %arg3[%c0_3, %c0_4] : memref<49x1024xf32, #tpu.memory_space<vmem>>, vector<49x1024xf32>
    tpu.vector_store %arg3[%c0_3, %c0_4], %2 {strides = array<i32>} : memref<49x1024xf32, #tpu.memory_space<vmem>>, vector<49x1024xf32>,
    return
  }
  func.func @transform_0(%arg0: i32) -> (i32, i32) {
    %c0_i32 = arith.constant 0 : i32
    %c0_i32_0 = arith.constant 0 : i32
    return %arg0, %c0_i32 : i32, i32
  }
  func.func @transform_1(%arg0: i32) -> (i32, i32) {
    %c0_i32 = arith.constant 0 : i32
    %c0_i32_0 = arith.constant 0 : i32
    return %arg0, %c0_i32 : i32, i32
  }
  func.func @transform_2(%arg0: i32) -> (i32, i32) {
    %c0_i32 = arith.constant 0 : i32
    %c0_i32_0 = arith.constant 0 : i32
    return %arg0, %c0_i32 : i32, i32
  }
}

</mosaic_0001>

<bundles_post_ra>
// kernel: tpu_custom_call.1
= control target key start
LH: loop header
LB: loop body
LE: loop exit
PB: predicated region body
PF: predicated region fallthrough
CT: control target
= control target key end

     0   :  { %7 = vsyncpa [#allocation3], 0  ;;  %s394_s0 = inlined_call_operand.hbm [shape: f32[49,1024], index: 0, kind: input, shape index: {}]   ;;  %s395_s1 = inlined_call_operand.hbm [shape: f32[49,1024], index: 1, kind: input, shape index: {}]   ;;  %s396_s2 = inlined_call_operand.hbm [shape: f32[49,1024], index: 2, kind: output, shape index: {}]  }
   0x1   :  { %8 = vsyncpa [#allocation6], 0 }
   0x2   :  { %9 = vsyncpa [#allocation4], 0  ;;  %s353_s9 = smov [#allocation2]  }
   0x3   :  { %s15_s10 = sshll.u32 %s353_s9, 4  ;;  %s16_s10 = int_to_ptr.vmem [resolvable:$true] %s15_s10 }
   0x4   :  { %s295_s11 = scalar_lea.vmem %s16_s10, 7168  ;;  %p300_p1 = scmp.lt.s32.totalorder %s16_s10, %s16_s10 }
   0x5   :  { %p296_p0 = scmp.ne.s32.totalorder %s16_s10, %s295_s11  ;;  %p301_p2 = scmp.lt.s32.totalorder %s295_s11, %s295_s11 }
   0x7   :  { %p302_p3 = por %p301_p2, %p300_p1 }
   0x9   :  { %p303_p4 = pnand %p302_p3, %p296_p0 }
   0xb   :  { %306 = shalt.err (!%p303_p4)
}
   0xc   :  { %s354_s12 = smov 1024   ;;  %s355_s13 = smov 64  }
   0xd   :  { %21 = dma.hbm_to_vmem [thread:$0]  %s394_s0, 7168, %s16_s10, [#allocation3], %s354_s12, %s354_s12, %s355_s13  }
   0xe   :  { %s356_s16 = smov [#allocation5]  }
   0xf   :  { %s27_s17 = sshll.u32 %s356_s16, 4  ;;  %s28_s17 = int_to_ptr.vmem [resolvable:$true] %s27_s17 }
  0x10   :  { %s315_s18 = scalar_lea.vmem %s28_s17, 7168  ;;  %p320_p6 = scmp.lt.s32.totalorder %s28_s17, %s28_s17 }
  0x11   :  { %p316_p5 = scmp.ne.s32.totalorder %s28_s17, %s315_s18  ;;  %p321_p7 = scmp.lt.s32.totalorder %s315_s18, %s315_s18 }
  0x13   :  { %p322_p8 = por %p321_p7, %p320_p6 }
  0x15   :  { %p323_p9 = pnand %p322_p8, %p316_p5 }
  0x17   :  { %326 = shalt.err (!%p323_p9)
}
  0x18   :  { %33 = dma.hbm_to_vmem [thread:$0]  %s395_s1, 7168, %s28_s17, [#allocation6], %s354_s12, %s354_s12, %s355_s13  }
  0x19   :  { %347 = dma.done.wait [#allocation3], 7168  }
  0x1a   :  { %348 = vsyncadd [#allocation3], 4294960128 }
  0x1b   :  { %349 = dma.done.wait [#allocation6], 7168  }
  0x1c   :  { %350 = vsyncadd [#allocation6], 4294960128  ;;  %v40_v0 = vld [vmem:[#allocation2] sm:$0xff]  ;;  %v41_v2 = vld [vmem:[#allocation2 + $0x8] sm:$0xff]  ;;  %s357_s0 = smov [#allocation7]  }
  0x1d   :  { %v96_v1 = vld [vmem:[#allocation5] sm:$0xff]  ;;  %v97_v4 = vld [vmem:[#allocation5 + $0x8] sm:$0xff]  ;;  %v42_v5 = vld [vmem:[#allocation2 + $0x10] sm:$0xff]  ;;  %s385_s1 = sshll.u32 %s357_s0, 4  ;;  %s270_s1 = int_to_ptr.vmem [resolvable:$true] %s385_s1 }
  0x1e   :  { %v152_v3 = vadd.f32 %v96_v1, %v40_v0  ;;  %v98_v6 = vld [vmem:[#allocation5 + $0x10] sm:$0xff]  ;;  %v153_v7 = vadd.f32 %v97_v4, %v41_v2  ;;  %v43_v9 = vld [vmem:[#allocation2 + $0x18] sm:$0xff]  ;;  %v44_v11 = vld [vmem:[#allocation2 + $0x20] sm:$0xff]  ;;  %s327_s21 = scalar_lea.vmem %s270_s1, 7168  ;;  %p332_p11 = scmp.lt.s32.totalorder %s270_s1, %s270_s1 }
  0x1f   :  { %v154_v8 = vadd.f32 %v98_v6, %v42_v5  ;;  %v99_v10 = vld [vmem:[#allocation5 + $0x18] sm:$0xff]  ;;  %v100_v13 = vld [vmem:[#allocation5 + $0x20] sm:$0xff]  ;;  %v45_v14 = vld [vmem:[#allocation2 + $0x28] sm:$0xff]  ;;  %p328_p10 = scmp.ne.s32.totalorder %s270_s1, %s327_s21  ;;  %p333_p12 = scmp.lt.s32.totalorder %s327_s21, %s327_s21 }
  0x20   :  { %208 = vst [vmem:[#allocation7] sm:$0xff] %v152_v3  ;;  %v155_v12 = vadd.f32 %v99_v10, %v43_v9  ;;  %v101_v15 = vld [vmem:[#allocation5 + $0x28] sm:$0xff]  ;;  %209 = vst [vmem:[#allocation7 + $0x8] sm:$0xff] %v153_v7  ;;  %v156_v16 = vadd.f32 %v100_v13, %v44_v11  ;;  %v46_v18 = vld [vmem:[#allocation2 + $0x30] sm:$0xff] }
  0x21   :  { %210 = vst [vmem:[#allocation7 + $0x10] sm:$0xff] %v154_v8  ;;  %v157_v17 = vadd.f32 %v101_v15, %v45_v14  ;;  %v102_v19 = vld [vmem:[#allocation5 + $0x30] sm:$0xff]  ;;  %v47_v20 = vld [vmem:[#allocation2 + $0x38] sm:$0xff]  ;;  %v48_v23 = vld [vmem:[#allocation2 + $0x40] sm:$0xff]  ;;  %p334_p13 = por %p333_p12, %p332_p11 }
  0x22   :  { %211 = vst [vmem:[#allocation7 + $0x18] sm:$0xff] %v155_v12  ;;  %v158_v21 = vadd.f32 %v102_v19, %v46_v18  ;;  %v103_v22 = vld [vmem:[#allocation5 + $0x38] sm:$0xff]  ;;  %v104_v24 = vld [vmem:[#allocation5 + $0x40] sm:$0xff]  ;;  %212 = vst [vmem:[#allocation7 + $0x20] sm:$0xff] %v156_v16 }
  0x23   :  { %213 = vst [vmem:[#allocation7 + $0x28] sm:$0xff] %v157_v17  ;;  %v159_v25 = vadd.f32 %v103_v22, %v47_v20  ;;  %v160_v26 = vadd.f32 %v104_v24, %v48_v23  ;;  %v49_v27 = vld [vmem:[#allocation2 + $0x48] sm:$0xff]  ;;  %v50_v29 = vld [vmem:[#allocation2 + $0x50] sm:$0xff]  ;;  %v51_v32 = vld [vmem:[#allocation2 + $0x58] sm:$0xff]  ;;  %p335_p0 = pnand %p334_p13, %p328_p10 }
  0x24   :  { %v105_v28 = vld [vmem:[#allocation5 + $0x48] sm:$0xff]  ;;  %214 = vst [vmem:[#allocation7 + $0x30] sm:$0xff] %v158_v21  ;;  %v106_v31 = vld [vmem:[#allocation5 + $0x50] sm:$0xff]  ;;  %v107_v33 = vld [vmem:[#allocation5 + $0x58] sm:$0xff] }
  0x25   :  { %v161_v30 = vadd.f32 %v105_v28, %v49_v27  ;;  %215 = vst [vmem:[#allocation7 + $0x38] sm:$0xff] %v159_v25  ;;  %216 = vst [vmem:[#allocation7 + $0x40] sm:$0xff] %v160_v26  ;;  %v162_v34 = vadd.f32 %v106_v31, %v50_v29  ;;  %v163_v35 = vadd.f32 %v107_v33, %v51_v32  ;;  %v52_v36 = vld [vmem:[#allocation2 + $0x60] sm:$0xff]  ;;  %v53_v38 = vld [vmem:[#allocation2 + $0x68] sm:$0xff] }
  0x26   :  { %v108_v37 = vld [vmem:[#allocation5 + $0x60] sm:$0xff]  ;;  %v109_v40 = vld [vmem:[#allocation5 + $0x68] sm:$0xff]  ;;  %v54_v41 = vld [vmem:[#allocation2 + $0x70] sm:$0xff] }
  0x27   :  { %217 = vst [vmem:[#allocation7 + $0x48] sm:$0xff] %v161_v30  ;;  %v164_v39 = vadd.f32 %v108_v37, %v52_v36  ;;  %v110_v42 = vld [vmem:[#allocation5 + $0x70] sm:$0xff]  ;;  %218 = vst [vmem:[#allocation7 + $0x50] sm:$0xff] %v162_v34  ;;  %v165_v43 = vadd.f32 %v109_v40, %v53_v38  ;;  %v55_v45 = vld [vmem:[#allocation2 + $0x78] sm:$0xff] }
  0x28   :  { %219 = vst [vmem:[#allocation7 + $0x58] sm:$0xff] %v163_v35  ;;  %v166_v44 = vadd.f32 %v110_v42, %v54_v41  ;;  %v111_v46 = vld [vmem:[#allocation5 + $0x78] sm:$0xff]  ;;  %v56_v47 = vld [vmem:[#allocation2 + $0x80] sm:$0xff]  ;;  %v57_v50 = vld [vmem:[#allocation2 + $0x88] sm:$0xff] }
  0x29   :  { %220 = vst [vmem:[#allocation7 + $0x60] sm:$0xff] %v164_v39  ;;  %v167_v48 = vadd.f32 %v111_v46, %v55_v45  ;;  %v112_v49 = vld [vmem:[#allocation5 + $0x80] sm:$0xff]  ;;  %v113_v51 = vld [vmem:[#allocation5 + $0x88] sm:$0xff]  ;;  %221 = vst [vmem:[#allocation7 + $0x68] sm:$0xff] %v165_v43 }
  0x2a   :  { %222 = vst [vmem:[#allocation7 + $0x70] sm:$0xff] %v166_v44  ;;  %v168_v52 = vadd.f32 %v112_v49, %v56_v47  ;;  %v169_v53 = vadd.f32 %v113_v51, %v57_v50  ;;  %v58_v54 = vld [vmem:[#allocation2 + $0x90] sm:$0xff]  ;;  %v59_v56 = vld [vmem:[#allocation2 + $0x98] sm:$0xff]  ;;  %v60_v59 = vld [vmem:[#allocation2 + $0xa0] sm:$0xff] }
  0x2b   :  { %v114_v55 = vld [vmem:[#allocation5 + $0x90] sm:$0xff]  ;;  %223 = vst [vmem:[#allocation7 + $0x78] sm:$0xff] %v167_v48  ;;  %v115_v58 = vld [vmem:[#allocation5 + $0x98] sm:$0xff]  ;;  %v116_v60 = vld [vmem:[#allocation5 + $0xa0] sm:$0xff] }
  0x2c   :  { %v170_v57 = vadd.f32 %v114_v55, %v58_v54  ;;  %224 = vst [vmem:[#allocation7 + $0x80] sm:$0xff] %v168_v52  ;;  %225 = vst [vmem:[#allocation7 + $0x88] sm:$0xff] %v169_v53  ;;  %v171_v61 = vadd.f32 %v115_v58, %v59_v56  ;;  %v172_v62 = vadd.f32 %v116_v60, %v60_v59  ;;  %v61_v63 = vld [vmem:[#allocation2 + $0xa8] sm:$0xff]  ;;  %v62_v1 = vld [vmem:[#allocation2 + $0xb0] sm:$0xff] }
  0x2d   :  { %v117_v0 = vld [vmem:[#allocation5 + $0xa8] sm:$0xff]  ;;  %v118_v3 = vld [vmem:[#allocation5 + $0xb0] sm:$0xff]  ;;  %v63_v4 = vld [vmem:[#allocation2 + $0xb8] sm:$0xff] }
  0x2e   :  { %226 = vst [vmem:[#allocation7 + $0x90] sm:$0xff] %v170_v57  ;;  %v173_v2 = vadd.f32 %v117_v0, %v61_v63  ;;  %v119_v5 = vld [vmem:[#allocation5 + $0xb8] sm:$0xff]  ;;  %227 = vst [vmem:[#allocation7 + $0x98] sm:$0xff] %v171_v61  ;;  %v174_v6 = vadd.f32 %v118_v3, %v62_v1  ;;  %v64_v8 = vld [vmem:[#allocation2 + $0xc0] sm:$0xff] }
  0x2f   :  { %228 = vst [vmem:[#allocation7 + $0xa0] sm:$0xff] %v172_v62  ;;  %v175_v7 = vadd.f32 %v119_v5, %v63_v4  ;;  %v120_v9 = vld [vmem:[#allocation5 + $0xc0] sm:$0xff]  ;;  %v65_v10 = vld [vmem:[#allocation2 + $0xc8] sm:$0xff]  ;;  %v66_v13 = vld [vmem:[#allocation2 + $0xd0] sm:$0xff] }
  0x30   :  { %229 = vst [vmem:[#allocation7 + $0xa8] sm:$0xff] %v173_v2  ;;  %v176_v11 = vadd.f32 %v120_v9, %v64_v8  ;;  %v121_v12 = vld [vmem:[#allocation5 + $0xc8] sm:$0xff]  ;;  %v122_v14 = vld [vmem:[#allocation5 + $0xd0] sm:$0xff]  ;;  %230 = vst [vmem:[#allocation7 + $0xb0] sm:$0xff] %v174_v6 }
  0x31   :  { %231 = vst [vmem:[#allocation7 + $0xb8] sm:$0xff] %v175_v7  ;;  %v177_v15 = vadd.f32 %v121_v12, %v65_v10  ;;  %v178_v16 = vadd.f32 %v122_v14, %v66_v13  ;;  %v67_v17 = vld [vmem:[#allocation2 + $0xd8] sm:$0xff]  ;;  %v68_v19 = vld [vmem:[#allocation2 + $0xe0] sm:$0xff]  ;;  %v69_v22 = vld [vmem:[#allocation2 + $0xe8] sm:$0xff] }
  0x32   :  { %v123_v18 = vld [vmem:[#allocation5 + $0xd8] sm:$0xff]  ;;  %232 = vst [vmem:[#allocation7 + $0xc0] sm:$0xff] %v176_v11  ;;  %v124_v21 = vld [vmem:[#allocation5 + $0xe0] sm:$0xff]  ;;  %v125_v23 = vld [vmem:[#allocation5 + $0xe8] sm:$0xff] }
  0x33   :  { %v179_v20 = vadd.f32 %v123_v18, %v67_v17  ;;  %233 = vst [vmem:[#allocation7 + $0xc8] sm:$0xff] %v177_v15  ;;  %234 = vst [vmem:[#allocation7 + $0xd0] sm:$0xff] %v178_v16  ;;  %v180_v24 = vadd.f32 %v124_v21, %v68_v19  ;;  %v181_v25 = vadd.f32 %v125_v23, %v69_v22  ;;  %v70_v26 = vld [vmem:[#allocation2 + $0xf0] sm:$0xff]  ;;  %v71_v28 = vld [vmem:[#allocation2 + $0xf8] sm:$0xff] }
  0x34   :  { %v126_v27 = vld [vmem:[#allocation5 + $0xf0] sm:$0xff]  ;;  %v127_v30 = vld [vmem:[#allocation5 + $0xf8] sm:$0xff]  ;;  %v72_v31 = vld [vmem:[#allocation2 + $0x100] sm:$0xff] }
  0x35   :  { %235 = vst [vmem:[#allocation7 + $0xd8] sm:$0xff] %v179_v20  ;;  %v182_v29 = vadd.f32 %v126_v27, %v70_v26  ;;  %v128_v32 = vld [vmem:[#allocation5 + $0x100] sm:$0xff]  ;;  %236 = vst [vmem:[#allocation7 + $0xe0] sm:$0xff] %v180_v24  ;;  %v183_v33 = vadd.f32 %v127_v30, %v71_v28  ;;  %v73_v35 = vld [vmem:[#allocation2 + $0x108] sm:$0xff] }
  0x36   :  { %237 = vst [vmem:[#allocation7 + $0xe8] sm:$0xff] %v181_v25  ;;  %v184_v34 = vadd.f32 %v128_v32, %v72_v31  ;;  %v129_v36 = vld [vmem:[#allocation5 + $0x108] sm:$0xff]  ;;  %v74_v37 = vld [vmem:[#allocation2 + $0x110] sm:$0xff]  ;;  %v75_v40 = vld [vmem:[#allocation2 + $0x118] sm:$0xff] }
  0x37   :  { %238 = vst [vmem:[#allocation7 + $0xf0] sm:$0xff] %v182_v29  ;;  %v185_v38 = vadd.f32 %v129_v36, %v73_v35  ;;  %v130_v39 = vld [vmem:[#allocation5 + $0x110] sm:$0xff]  ;;  %v131_v41 = vld [vmem:[#allocation5 + $0x118] sm:$0xff]  ;;  %239 = vst [vmem:[#allocation7 + $0xf8] sm:$0xff] %v183_v33 }
  0x38   :  { %240 = vst [vmem:[#allocation7 + $0x100] sm:$0xff] %v184_v34  ;;  %v186_v42 = vadd.f32 %v130_v39, %v74_v37  ;;  %v187_v43 = vadd.f32 %v131_v41, %v75_v40  ;;  %v76_v44 = vld [vmem:[#allocation2 + $0x120] sm:$0xff]  ;;  %v77_v46 = vld [vmem:[#allocation2 + $0x128] sm:$0xff]  ;;  %v78_v49 = vld [vmem:[#allocation2 + $0x130] sm:$0xff] }
  0x39   :  { %v132_v45 = vld [vmem:[#allocation5 + $0x120] sm:$0xff]  ;;  %241 = vst [vmem:[#allocation7 + $0x108] sm:$0xff] %v185_v38  ;;  %v133_v48 = vld [vmem:[#allocation5 + $0x128] sm:$0xff]  ;;  %v134_v50 = vld [vmem:[#allocation5 + $0x130] sm:$0xff] }
  0x3a   :  { %v188_v47 = vadd.f32 %v132_v45, %v76_v44  ;;  %242 = vst [vmem:[#allocation7 + $0x110] sm:$0xff] %v186_v42  ;;  %243 = vst [vmem:[#allocation7 + $0x118] sm:$0xff] %v187_v43  ;;  %v189_v51 = vadd.f32 %v133_v48, %v77_v46  ;;  %v190_v52 = vadd.f32 %v134_v50, %v78_v49  ;;  %v79_v53 = vld [vmem:[#allocation2 + $0x138] sm:$0xff]  ;;  %v80_v55 = vld [vmem:[#allocation2 + $0x140] sm:$0xff] }
  0x3b   :  { %v135_v54 = vld [vmem:[#allocation5 + $0x138] sm:$0xff]  ;;  %v136_v57 = vld [vmem:[#allocation5 + $0x140] sm:$0xff]  ;;  %v81_v58 = vld [vmem:[#allocation2 + $0x148] sm:$0xff] }
  0x3c   :  { %244 = vst [vmem:[#allocation7 + $0x120] sm:$0xff] %v188_v47  ;;  %v191_v56 = vadd.f32 %v135_v54, %v79_v53  ;;  %v137_v59 = vld [vmem:[#allocation5 + $0x148] sm:$0xff]  ;;  %245 = vst [vmem:[#allocation7 + $0x128] sm:$0xff] %v189_v51  ;;  %v192_v60 = vadd.f32 %v136_v57, %v80_v55  ;;  %v82_v62 = vld [vmem:[#allocation2 + $0x150] sm:$0xff] }
  0x3d   :  { %246 = vst [vmem:[#allocation7 + $0x130] sm:$0xff] %v190_v52  ;;  %v193_v61 = vadd.f32 %v137_v59, %v81_v58  ;;  %v138_v63 = vld [vmem:[#allocation5 + $0x150] sm:$0xff]  ;;  %v83_v0 = vld [vmem:[#allocation2 + $0x158] sm:$0xff]  ;;  %v84_v3 = vld [vmem:[#allocation2 + $0x160] sm:$0xff] }
  0x3e   :  { %247 = vst [vmem:[#allocation7 + $0x138] sm:$0xff] %v191_v56  ;;  %v194_v1 = vadd.f32 %v138_v63, %v82_v62  ;;  %v139_v2 = vld [vmem:[#allocation5 + $0x158] sm:$0xff]  ;;  %v140_v4 = vld [vmem:[#allocation5 + $0x160] sm:$0xff]  ;;  %248 = vst [vmem:[#allocation7 + $0x140] sm:$0xff] %v192_v60 }
  0x3f   :  { %249 = vst [vmem:[#allocation7 + $0x148] sm:$0xff] %v193_v61  ;;  %v195_v5 = vadd.f32 %v139_v2, %v83_v0  ;;  %v196_v6 = vadd.f32 %v140_v4, %v84_v3  ;;  %v85_v7 = vld [vmem:[#allocation2 + $0x168] sm:$0xff]  ;;  %v86_v9 = vld [vmem:[#allocation2 + $0x170] sm:$0xff]  ;;  %v87_v12 = vld [vmem:[#allocation2 + $0x178] sm:$0xff] }
  0x40   :  { %v141_v8 = vld [vmem:[#allocation5 + $0x168] sm:$0xff]  ;;  %250 = vst [vmem:[#allocation7 + $0x150] sm:$0xff] %v194_v1  ;;  %v142_v11 = vld [vmem:[#allocation5 + $0x170] sm:$0xff]  ;;  %v143_v13 = vld [vmem:[#allocation5 + $0x178] sm:$0xff] }
  0x41   :  { %v197_v10 = vadd.f32 %v141_v8, %v85_v7  ;;  %251 = vst [vmem:[#allocation7 + $0x158] sm:$0xff] %v195_v5  ;;  %252 = vst [vmem:[#allocation7 + $0x160] sm:$0xff] %v196_v6  ;;  %v198_v14 = vadd.f32 %v142_v11, %v86_v9  ;;  %v199_v15 = vadd.f32 %v143_v13, %v87_v12  ;;  %v88_v16 = vld [vmem:[#allocation2 + $0x180] sm:$0x1]  ;;  %v89_v18 = vld [vmem:[#allocation2 + $0x188] sm:$0x1] }
  0x42   :  { %v144_v17 = vld [vmem:[#allocation5 + $0x180] sm:$0x1]  ;;  %v145_v20 = vld [vmem:[#allocation5 + $0x188] sm:$0x1]  ;;  %v90_v21 = vld [vmem:[#allocation2 + $0x190] sm:$0x1] }
  0x43   :  { %253 = vst [vmem:[#allocation7 + $0x168] sm:$0xff] %v197_v10  ;;  %v200_v19 = vadd.f32 %v144_v17, %v88_v16  ;;  %v146_v22 = vld [vmem:[#allocation5 + $0x190] sm:$0x1]  ;;  %254 = vst [vmem:[#allocation7 + $0x170] sm:$0xff] %v198_v14  ;;  %v201_v23 = vadd.f32 %v145_v20, %v89_v18  ;;  %v91_v25 = vld [vmem:[#allocation2 + $0x198] sm:$0x1] }
  0x44   :  { %255 = vst [vmem:[#allocation7 + $0x178] sm:$0xff] %v199_v15  ;;  %v202_v24 = vadd.f32 %v146_v22, %v90_v21  ;;  %v147_v26 = vld [vmem:[#allocation5 + $0x198] sm:$0x1]  ;;  %v92_v27 = vld [vmem:[#allocation2 + $0x1a0] sm:$0x1] }
  0x45   :  { %256 = vst [vmem:[#allocation7 + $0x180] sm:$0x1] %v200_v19  ;;  %v203_v28 = vadd.f32 %v147_v26, %v91_v25  ;;  %v148_v29 = vld [vmem:[#allocation5 + $0x1a0] sm:$0x1]  ;;  %v93_v30 = vld [vmem:[#allocation2 + $0x1a8] sm:$0x1] }
  0x46   :  { %v149_v31 = vld [vmem:[#allocation5 + $0x1a8] sm:$0x1]  ;;  %257 = vst [vmem:[#allocation7 + $0x188] sm:$0x1] %v201_v23  ;;  %258 = vst [vmem:[#allocation7 + $0x190] sm:$0x1] %v202_v24  ;;  %v204_v32 = vadd.f32 %v148_v29, %v92_v27 }
  0x47   :  { %v205_v33 = vadd.f32 %v149_v31, %v93_v30  ;;  %v94_v34 = vld [vmem:[#allocation2 + $0x1b0] sm:$0x1]  ;;  %v95_v36 = vld [vmem:[#allocation2 + $0x1b8] sm:$0x1]  ;;  %259 = vst [vmem:[#allocation7 + $0x198] sm:$0x1] %v203_v28 }
  0x48   :  { %v150_v35 = vld [vmem:[#allocation5 + $0x1b0] sm:$0x1]  ;;  %v151_v38 = vld [vmem:[#allocation5 + $0x1b8] sm:$0x1]  ;;  %260 = vst [vmem:[#allocation7 + $0x1a0] sm:$0x1] %v204_v32 }
  0x49   :  { %v206_v37 = vadd.f32 %v150_v35, %v94_v34  ;;  %261 = vst [vmem:[#allocation7 + $0x1a8] sm:$0x1] %v205_v33  ;;  %v207_v39 = vadd.f32 %v151_v38, %v95_v36 }
  0x4b   :  { %262 = vst [vmem:[#allocation7 + $0x1b0] sm:$0x1] %v206_v37  ;;  %263 = vst [vmem:[#allocation7 + $0x1b8] sm:$0x1] %v207_v39 }
  0x4c   :  { %338 = shalt.err (!%p335_p0)
}
  0x4d   :  { %275 = dma.vmem_to_hbm [thread:$0]  %s270_s1, 7168, %s396_s2, [#allocation4], %s354_s12, %s354_s12, %s355_s13  }
  0x4e   :  { %351 = dma.done.wait [#allocation4], 7168  }
  0x4f   :  { %352 = vsyncadd [#allocation4], 4294960128 }
  0x50   :  { %279 = vsyncpa [#allocation3], 1 }
  0x51   :  { %280 = vsyncpa [#allocation6], 1 }
  0x52   :  { %281 = vsyncpa [#allocation4], 1 }

</bundles_post_ra>
